<compile_context>
chip_gen: v5e
topology: v5e:2x2
jax: 0.10.0
libtpu: 0.0.40
codegen_flags: <defaults>
</compile_context>

<pallas_src>
import math

import jax
import jax.numpy as jnp
from jax.experimental import pallas as pl
from jax.experimental.pallas import tpu as pltpu


def _cdiv(a: int, b: int) -> int:
    return -(-a // b)


def _repeat_kernel(x_ref, o_ref):
    # x_ref: (rows_tile, lane)       -- input tile, fetched once per row tile
    # o_ref: (tb, rows_tile, lane)   -- tb time-step copies written per step
    # Per-iteration ref-to-ref copies: the multi-MiB block streams VMEM->VMEM
    # instead of being hoisted into (too-small) vregs.
    for i in range(o_ref.shape[0]):  # tb is small & static -> unrolled
        o_ref[i] = x_ref[...]


def _chip_budgets():
    """(in_budget, out_budget, vmem_limit_cap) tuned per TPU generation."""
    try:
        vmem_phys = pltpu.get_tpu_info().vmem_capacity_bytes
    except Exception:
        vmem_phys = None
    if vmem_phys is not None and vmem_phys >= 96 * 1024 * 1024:
        # v5e / v6e: 128 MiB physical VMEM -> large blocks, lifted clamp.
        return 4 << 20, 16 << 20, 80 << 20
    # v7x (64 MiB physical VMEM) or unknown: small input buffer, output block
    # grown via tb only, stay well under physical VMEM.
    return 2 << 20, 8 << 20, 44 << 20


def _pick_lane(n_total: int, sublane: int):
    """Lane width + padded flat size for a lane-dense (rows, lane) slab."""
    if n_total % 128 == 0:
        cands = [c for c in (1024, 512, 256, 128) if n_total % c == 0]
        # Prefer a lane width that leaves rows a multiple of the packed
        # sublane count (full-tile packing for bf16 / int8 as well as f32).
        for c in cands:
            if (n_total // c) % sublane == 0:
                return c, n_total
        return cands[0], n_total
    # Pad up to a lane-dense slab; the tail is sliced off the output.
    pad_unit = sublane * 128
    return 128, _cdiv(n_total, pad_unit) * pad_unit


def repeat_t(x, t: int):
    """einops.repeat(x, '... -> t ...', t=t) via a Pallas TPU kernel."""
    orig_shape = tuple(x.shape)
    n_total = math.prod(orig_shape) if orig_shape else 1
    itemsize = jnp.dtype(x.dtype).itemsize
    # Dtype-aware sublane packing: 8 rows for f32, 16 for bf16, 32 for int8.
    sublane = max(8, 32 // itemsize)

    in_budget, out_budget, vmem_cap = _chip_budgets()

    # ---- lane-dense 2-D slab layout (pure layout plumbing) ------------------
    lane, n_flat = _pick_lane(n_total, sublane)
    rows = n_flat // lane
    x_flat = x.reshape(-1)
    if n_flat != n_total:
        x_flat = jnp.pad(x_flat, (0, n_flat - n_total))
    x2d = x_flat.reshape(rows, lane)

    bytes_per_row = lane * itemsize

    # ---- row tiling: cdiv-based, ragged last tile allowed --------------------
    budget_rows = max(sublane, (in_budget // bytes_per_row) // sublane * sublane)
    rows_tile = rows if rows <= budget_rows else budget_rows
    n_tiles = _cdiv(rows, rows_tile)

    # ---- time batching: any T (ragged last time block), capped unroll --------
    out_slice_bytes = rows_tile * bytes_per_row
    tb = max(1, min(t, out_budget // out_slice_bytes, 128))
    t_steps = _cdiv(t, tb)
    # Give the second TensorCore (v7x megacore) work on tiny single-step grids.
    if n_tiles == 1 and t_steps == 1 and t >= 2:
        tb = _cdiv(t, 2)
        t_steps = _cdiv(t, tb)

    in_block_bytes = rows_tile * bytes_per_row
    out_block_bytes = tb * rows_tile * bytes_per_row
    # Double-buffered in+out blocks with headroom, clamped per generation.
    vmem_limit = int(min(max(3 * (in_block_bytes + out_block_bytes), 16 << 20),
                         vmem_cap))

    out3d = pl.pallas_call(
        _repeat_kernel,
        out_shape=jax.ShapeDtypeStruct((t, rows, lane), x.dtype),
        grid_spec=pltpu.PrefetchScalarGridSpec(
            num_scalar_prefetch=0,
            # Time innermost: the input tile's block index is constant across
            # the inner loop, so each input tile is read from HBM exactly once.
            grid=(n_tiles, t_steps),
            in_specs=[pl.BlockSpec((rows_tile, lane), lambda ni, ti: (ni, 0))],
            out_specs=pl.BlockSpec((tb, rows_tile, lane),
                                   lambda ni, ti: (ti, ni, 0)),
        ),
        compiler_params=pltpu.CompilerParams(
            dimension_semantics=("parallel", "parallel"),
            vmem_limit_bytes=vmem_limit,
        ),
        cost_estimate=pl.CostEstimate(
            flops=0,
            transcendentals=0,
            bytes_accessed=(1 + t) * n_total * itemsize,
        ),
    )(x2d)

    out_flat = out3d.reshape(t, n_flat)
    if n_flat != n_total:
        out_flat = out_flat[:, :n_total]
    return out_flat.reshape((t,) + orig_shape)


if __name__ == "__main__":
    key = jax.random.PRNGKey(0)

    # Main shape consistent with the module's SNN usage.
    B, C, H, W, T = 2, 4, 16, 16, 8
    x = jax.random.normal(key, (B, C, H, W), dtype=jnp.float32)

    out = jax.block_until_ready(repeat_t(x, T))
    ref = jnp.broadcast_to(x[None], (T, B, C, H, W))
    assert out.shape == (T, B, C, H, W)
    assert out.dtype == x.dtype
    assert bool(jnp.array_equal(out, ref))

    # Padded / non-128-divisible path (element count 210), odd T.
    x2 = jax.random.normal(jax.random.PRNGKey(1), (2, 3, 5, 7), dtype=jnp.float32)
    out2 = jax.block_until_ready(repeat_t(x2, 3))
    ref2 = jnp.broadcast_to(x2[None], (3, 2, 3, 5, 7))
    assert bool(jnp.array_equal(out2, ref2))

    # bf16 (dtype-aware sublane packing) with odd / ragged time batching.
    x3 = jax.random.normal(jax.random.PRNGKey(2), (2, 4, 16, 16),
                           dtype=jnp.bfloat16)
    out3 = jax.block_until_ready(repeat_t(x3, 7))
    ref3 = jnp.broadcast_to(x3[None], (7, 2, 4, 16, 16))
    assert out3.dtype == jnp.bfloat16
    assert bool(jnp.array_equal(out3, ref3))

    print("KERNEL_OK")
</pallas_src>

<mosaic_0001>
module attributes {stable_mosaic.version = 11 : i64} {
  func.func @_repeat_kernel(%arg0: i32, %arg1: i32, %arg2: memref<8x256xf32, #tpu.memory_space<vmem>>, %arg3: memref<4x8x256xf32, #tpu.memory_space<vmem>>) attributes {dimension_semantics = [#tpu.dimension_semantics<parallel>, #tpu.dimension_semantics<parallel>], iteration_bounds = array<i64: 1, 2>, scalar_prefetch = 0 : i64, scratch_operands = 0 : i64, tpu.core_type = #tpu.core_type<tc>, window_params = [{transform_indices = @transform_0, window_bounds = array<i64: 8, 256>}, {transform_indices = @transform_1, window_bounds = array<i64: 4, 8, 256>}]} {
    %c0 = arith.constant 0 : index
    %c0_0 = arith.constant 0 : index
    %0 = vector.load %arg2[%c0, %c0_0] : memref<8x256xf32, #tpu.memory_space<vmem>>, vector<8x256xf32>
    %c0_1 = arith.constant 0 : index
    %c0_2 = arith.constant 0 : index
    %c0_3 = arith.constant 0 : index
    %1 = vector.load %arg3[%c0_1, %c0_2, %c0_3] : memref<4x8x256xf32, #tpu.memory_space<vmem>>, vector<1x8x256xf32>
    %2 = vector.shape_cast %1 : vector<1x8x256xf32> to vector<8x256xf32>
    %3 = vector.shape_cast %0 : vector<8x256xf32> to vector<1x8x256xf32>
    tpu.vector_store %arg3[%c0_1, %c0_2, %c0_3], %3 {strides = array<i32>} : memref<4x8x256xf32, #tpu.memory_space<vmem>>, vector<1x8x256xf32>,
    %c0_4 = arith.constant 0 : index
    %c0_5 = arith.constant 0 : index
    %4 = vector.load %arg2[%c0_4, %c0_5] : memref<8x256xf32, #tpu.memory_space<vmem>>, vector<8x256xf32>
    %c1 = arith.constant 1 : index
    %c0_6 = arith.constant 0 : index
    %c0_7 = arith.constant 0 : index
    %5 = vector.load %arg3[%c1, %c0_6, %c0_7] : memref<4x8x256xf32, #tpu.memory_space<vmem>>, vector<1x8x256xf32>
    %6 = vector.shape_cast %5 : vector<1x8x256xf32> to vector<8x256xf32>
    %7 = vector.shape_cast %4 : vector<8x256xf32> to vector<1x8x256xf32>
    tpu.vector_store %arg3[%c1, %c0_6, %c0_7], %7 {strides = array<i32>} : memref<4x8x256xf32, #tpu.memory_space<vmem>>, vector<1x8x256xf32>,
    %c0_8 = arith.constant 0 : index
    %c0_9 = arith.constant 0 : index
    %8 = vector.load %arg2[%c0_8, %c0_9] : memref<8x256xf32, #tpu.memory_space<vmem>>, vector<8x256xf32>
    %c2 = arith.constant 2 : index
    %c0_10 = arith.constant 0 : index
    %c0_11 = arith.constant 0 : index
    %9 = vector.load %arg3[%c2, %c0_10, %c0_11] : memref<4x8x256xf32, #tpu.memory_space<vmem>>, vector<1x8x256xf32>
    %10 = vector.shape_cast %9 : vector<1x8x256xf32> to vector<8x256xf32>
    %11 = vector.shape_cast %8 : vector<8x256xf32> to vector<1x8x256xf32>
    tpu.vector_store %arg3[%c2, %c0_10, %c0_11], %11 {strides = array<i32>} : memref<4x8x256xf32, #tpu.memory_space<vmem>>, vector<1x8x256xf32>,
    %c0_12 = arith.constant 0 : index
    %c0_13 = arith.constant 0 : index
    %12 = vector.load %arg2[%c0_12, %c0_13] : memref<8x256xf32, #tpu.memory_space<vmem>>, vector<8x256xf32>
    %c3 = arith.constant 3 : index
    %c0_14 = arith.constant 0 : index
    %c0_15 = arith.constant 0 : index
    %13 = vector.load %arg3[%c3, %c0_14, %c0_15] : memref<4x8x256xf32, #tpu.memory_space<vmem>>, vector<1x8x256xf32>
    %14 = vector.shape_cast %13 : vector<1x8x256xf32> to vector<8x256xf32>
    %15 = vector.shape_cast %12 : vector<8x256xf32> to vector<1x8x256xf32>
    tpu.vector_store %arg3[%c3, %c0_14, %c0_15], %15 {strides = array<i32>} : memref<4x8x256xf32, #tpu.memory_space<vmem>>, vector<1x8x256xf32>,
    return
  }
  func.func @transform_0(%arg0: i32, %arg1: i32) -> (i32, i32) {
    %c0_i32 = arith.constant 0 : i32
    %c0_i32_0 = arith.constant 0 : i32
    return %arg0, %c0_i32 : i32, i32
  }
  func.func @transform_1(%arg0: i32, %arg1: i32) -> (i32, i32, i32) {
    %c0_i32 = arith.constant 0 : i32
    %c0_i32_0 = arith.constant 0 : i32
    return %arg1, %arg0, %c0_i32 : i32, i32, i32
  }
}

</mosaic_0001>

<bundles_post_ra>
// kernel: tpu_custom_call.1
= control target key start
LH: loop header
LB: loop body
LE: loop exit
PB: predicated region body
PF: predicated region fallthrough
CT: control target
= control target key end

     0   :  { %6 = vsyncpa [#allocation3], 0  ;;  %s557_s0 = inlined_call_operand.hbm [shape: f32[8,256], index: 0, kind: input, shape index: {}]   ;;  %s558_s1 = inlined_call_operand.hbm [shape: f32[8,8,256], index: 1, kind: output, shape index: {}]  }
   0x1   :  { %7 = vsyncpa [#allocation4], 0 }
   0x2   :  { %9 = vsyncpa [#allocation4 + $0x1], 0  ;;  %s462_s6 = smov 0   ;;  %s464_s7 = smov 0  }
   0x3   :  { %s466_s8 = smov 0   ;;  %s468_s9 = smov 0  }
   0x4   :  { %s470_s10 = smov 0   ;;  %s472_s11 = smov 0  }
   0x5 LB: > { %s246_s12 = sadd.s32 4294967295, %s447_s11   ;;  %s247_s13 = sadd.s32 4294967294, %s447_s11   ;;  %s447_s11 = sphi %s472_s11, %s15_s11   ;;  %s443_s10 = sphi %s470_s10, %s565_s10   ;;  %s439_s9 = sphi %s468_s9, %s564_s9   ;;  %s435_s8 = sphi %s466_s8, %s563_s8   ;;  %s431_s7 = sphi %s464_s7, %s562_s7   ;;  %s427_s6 = sphi %s462_s6, %s561_s6  }
   0x6   : > { %s24_s14 = sadd.s32 1, %s443_s10  ;;  %s62_s15 = sadd.s32 1, %s435_s8 }
   0x7   : > { %p25_p0 = scmp.ge.s32.totalorder %s24_s14, 2  ;;  %p72_p1 = scmp.ne.s32.totalorder %s435_s8, %s431_s7 }
   0x8   : > { %p73_p2 = scmp.eq.s32.totalorder %s246_s12, 1  ;;  %p78_p3 = scmp.ne.s32.totalorder %s431_s7, %s427_s6 }
   0x9   : > { %s567_s14 = smov (%p25_p0, %s24_s14), 0  ;;  %p79_p5 = scmp.eq.s32.totalorder %s247_s13, 1 }
   0xa   : > { %p502_p4 = por %p73_p2, %p72_p1  ;;  %s57_s17 = ssub.s32 %s443_s10, %s567_s14 }
   0xb   : > { %p248_p6 = scmp.ge.s32.totalorder %s447_s11, 1  ;;  %p60_p7 = scmp.eq.s32.totalorder %s57_s17, 0 }
   0xc   : > { %p509_p8 = por %p79_p5, %p78_p3  ;;  %p86_p9 = scmp.lt.s32.totalorder %s447_s11, 3 }
   0xd   : > { %s515_s19 = scalar_select %p60_p7, %s435_s8, %s62_s15  }
   0xe   : > { %p87_p10 = pnand %p248_p6, %p86_p9  ;;  %p281_p11 = scmp.eq.s32.totalorder %s246_s12, 0 }
   0xf   : > { %s101_s22 = sshll.u32 %s557_s0, 4  ;;  %s449_s23 = smov [#allocation2]   ;;  %s102_s22 = int_to_ptr.hbm [resolvable:$true] %s101_s22 }
  0x10   : > { %p273_p12 = pneg %p87_p10  ;;  %s103_s24 = sshll.u32 %s449_s23, 4  ;;  %s104_s24 = int_to_ptr.vmem [resolvable:$true] %s103_s24 }
  0x11   : > { %116 = sbr.rel (%p87_p10) target bundleno = 40 (0x28), region = 24 }
  0x12   : > { %p274_p13 = pnand %p281_p11, %p273_p12 }
  0x14   : > { %276 = dma.hbm_to_vmem [thread:$0]  (!%p274_p13), %s102_s22, 256, %s104_s24, [#allocation3]  }
  0x16   : > { %418 = dma.done.wait (%p281_p11), [#allocation3], 256  }
  0x17   : > { %420 = vsyncadd (%p281_p11), [#allocation3], 4294967040  ;;  %s129_s25 = sand.u32 1, %s431_s7   ;;  %s266_s27 = sshll.u32 %s439_s9, 6  ;;  %v133_v0 = vld [vmem:[#allocation2] sm:$0xff]  ;;  %v134_v1 = vld [vmem:[#allocation2 + $0x8] sm:$0xff] }
  0x18   : > { %s252_s26 = sshll.u32 %s129_s25, 6  ;;  %s167_s30 = scalar_lea.hbm %s558_s1, %s266_s27 }
  0x19   : > { %s131_s2 = scalar_lea.vmem [#allocation5], %s252_s26  ;;  %s170_s4 = sshll.u32 %s167_s30, 4  ;;  %s171_s4 = int_to_ptr.hbm [resolvable:$true] %s170_s4 }
  0x1a   : > { %135 = vst [vmem:[%s131_s2] sm:$0xff] %v133_v0  ;;  %s168_s3 = sshll.u32 %s131_s2, 4  ;;  %s153_s5 = scalar_lea.sflag [#allocation4], %s129_s25  ;;  %s169_s3 = int_to_ptr.vmem [resolvable:$true] %s168_s3 }
  0x1b   : > { %136 = vst [vmem:[%s131_s2 + $0x8] sm:$0xff] %v134_v1  ;;  %s379_s9 = sshra.s32 %s171_s4, 4  ;;  %s385_s17 = scalar_lea.hbm %s558_s1, 128  ;;  %s380_s9 = int_to_ptr.hbm [resolvable:$true] %s379_s9 }
  0x1c   : > { %253 = vst [vmem:[%s131_s2 + $0x10] sm:$0xff] %v133_v0  ;;  %s381_s12 = scalar_lea.hbm %s380_s9, 64  ;;  %p386_p3 = scmp.lt.s32.totalorder %s380_s9, %s558_s1 }
  0x1d   : > { %254 = vst [vmem:[%s131_s2 + $0x18] sm:$0xff] %v134_v1  ;;  %p382_p0 = scmp.ne.s32.totalorder %s380_s9, %s381_s12  ;;  %p387_p5 = scmp.lt.s32.totalorder %s385_s17, %s381_s12 }
  0x1e   : > { %255 = vst [vmem:[%s131_s2 + $0x20] sm:$0xff] %v133_v0 }
  0x1f   : > { %256 = vst [vmem:[%s131_s2 + $0x28] sm:$0xff] %v134_v1  ;;  %p383_p1 = pnand %p382_p0, %p502_p4  ;;  %p388_p6 = por %p387_p5, %p386_p3 }
  0x20   : > { %257 = vst [vmem:[%s131_s2 + $0x30] sm:$0xff] %v133_v0 }
  0x21   : > { %258 = vst [vmem:[%s131_s2 + $0x38] sm:$0xff] %v134_v1  ;;  %p384_p2 = pneg %p383_p1 }
  0x23   : > { %p389_p7 = pnand %p388_p6, %p384_p2 }
  0x25   : > { %392 = shalt.err (!%p389_p7)
}
  0x26   : > { %s450_s22 = smov 256   ;;  %s451_s23 = smov 16  }
  0x27   : > { %271 = dma.vmem_to_hbm [thread:$0]  (%p502_p4), %s169_s3, 1024, %s171_s4, %s153_s5, %s450_s22, %s450_s22, %s451_s23  }
  0x28 PF: > { %p283_p9 = scmp.ge.s32.totalorder %s447_s11, 2  ;;  %s185_s24 = sand.u32 1, %s427_s6  }
  0x29   : > { %s186_s25 = scalar_lea.sflag [#allocation4], %s185_s24 }
  0x2a   : > { %p278_p10 = pnand %p283_p9, %p509_p8 }
  0x2c   : > { %p279_p11 = pneg %p278_p10 }
  0x2e   : > { %422 = dma.done.wait (%p279_p11), %s186_s25, 1024  }
  0x2f   : > { %424 = vsyncadd (%p279_p11), %s186_s25, 4294966272  ;;  %s15_s11 = sadd.s32 1, %s447_s11   ;;  %s561_s6 = smov %s431_s7 }
  0x30   : > { %p12_p12 = scmp.ge.s32.totalorder %s15_s11, 4   ;;  %s562_s7 = smov %s435_s8 }
  0x31   : > { %s563_s8 = smov %s515_s19  ;;  %s564_s9 = smov %s443_s10 }
  0x32   : > { %s565_s10 = smov %s567_s14  ;;  %14 = sbr.rel (!%p12_p12) target bundleno = 5 (0x5), region = 65 }
  0x37   :  { %192 = vsyncpa [#allocation3], 1 }
  0x38   :  { %194 = vsyncpa [#allocation3 + $0x1], 1 }
  0x39   :  { %195 = vsyncpa [#allocation4], 1 }
  0x3a   :  { %197 = vsyncpa [#allocation4 + $0x1], 1 }

</bundles_post_ra>
